<compile_context>
chip_gen: v6e
topology: v6e:2x2x1
jax: 0.10.0
libtpu: 0.0.40
codegen_flags: <defaults>
</compile_context>

<pallas_src>
import functools

import jax
import jax.numpy as jnp
from jax.experimental import pallas as pl
from jax.experimental.pallas import tpu as pltpu

KSIZE = 7     # the module's "conv3x3" is actually a k=7 Conv1d
PAD = 3       # padding=3, stride=1 -> "same" length
LANE = 128    # Cout lane-padding target (one full lane tile)


def se_basic_block_kernel(x_ref, w1_ref, b1_ref, w2_ref, b2_ref,
                          sw1_ref, sw2_ref, o_ref, *,
                          batches_per_block, length, channels):
    gb, L, C = batches_per_block, length, channels
    rows = gb * L
    x = x_ref[...]                                    # (rows, C) f32

    # Within-batch position of every row (0..L-1); tile-aligned 3-D iota
    # (avoids integer remainder). Width C (not Cp) keeps vreg use small.
    pos = jax.lax.broadcasted_iota(jnp.int32, (gb, L, C), 1).reshape(rows, C)

    # Boundary masks per conv tap; shared by conv1 & conv2.
    masks = []
    for k in range(KSIZE):
        off = k - PAD
        if off < 0:
            masks.append(pos >= -off)
        elif off > 0:
            masks.append(pos < L - off)
        else:
            masks.append(None)

    def conv_bn(v, w_ref, b_ref):
        # k=7 "same" conv as ONE im2col matmul with K = 7*C (no K padding):
        # (rows, 7*C)bf16 @ (7*C, Cp)bf16 -> f32.  Shifted taps are built with
        # sublane rolls; masks zero rows whose receptive field leaves the
        # batch, so rolling across batches inside the block never leaks data.
        # (On v7x a 7-way per-tap accumulating matmul would avoid the slab;
        #  the single im2col matmul is kept for the v5e/v6e MRF path.)
        pieces = []
        for k in range(KSIZE):
            off = k - PAD
            if off == 0:
                pieces.append(v)
            else:
                rolled = pltpu.roll(v, (-off) % rows, 0)   # rolled[p] = v[p + off]
                pieces.append(jnp.where(masks[k], rolled, 0.0))
        slab = jnp.concatenate(pieces, axis=1).astype(jnp.bfloat16)  # (rows, 7*C)
        out = jnp.dot(slab, w_ref[...], preferred_element_type=jnp.float32)
        return out + b_ref[...]                       # BN shift (scale folded into w)

    out1 = jnp.maximum(conv_bn(x, w1_ref, b1_ref), 0.0)       # conv1 + bn1 + relu
    out2 = conv_bn(out1[:, :C], w2_ref, b2_ref)               # conv2 + bn2  (rows, Cp)

    # SE gate, vectorized across the gb batches of this block.
    Cp = out2.shape[-1]
    out3 = out2.reshape(gb, L, Cp)
    y = (jnp.sum(out3, axis=1) * (1.0 / L)).astype(jnp.bfloat16)      # pooled (gb, Cp)
    h = jnp.maximum(
        jnp.dot(y, sw1_ref[...], preferred_element_type=jnp.float32), 0.0)
    gate = jax.nn.sigmoid(
        jnp.dot(h.astype(jnp.bfloat16), sw2_ref[...],
                preferred_element_type=jnp.float32))                   # (gb, Cp) f32

    # gate * out + residual + relu, stored at the real channel count.
    res = jnp.maximum(out3[:, :, :C] * gate[:, None, :C]
                      + x.reshape(gb, L, C), 0.0)
    o_ref[...] = res.reshape(rows, C)


def prepare_params(params):
    """One-time prep: fold BN scale into conv weights, pad Cout to 128 lanes,
    pack K at 7*C, pad SE hidden to 8, cast matmul operands to bf16."""
    f32, bf16 = jnp.float32, jnp.bfloat16
    C = params["w1"].shape[1]
    RED = params["se_w1"].shape[1]
    Cp = ((C + LANE - 1) // LANE) * LANE
    Hp = ((RED + 7) // 8) * 8

    w1 = params["w1"] * params["s1"][0][None, None, :]
    w2 = params["w2"] * params["s2"][0][None, None, :]
    w1p = (jnp.zeros((KSIZE, C, Cp), f32).at[:, :, :C].set(w1)
           .reshape(KSIZE * C, Cp).astype(bf16))
    w2p = (jnp.zeros((KSIZE, C, Cp), f32).at[:, :, :C].set(w2)
           .reshape(KSIZE * C, Cp).astype(bf16))
    b1p = jnp.zeros((1, Cp), f32).at[:, :C].set(params["b1"])
    b2p = jnp.zeros((1, Cp), f32).at[:, :C].set(params["b2"])
    sw1p = jnp.zeros((Cp, Hp), f32).at[:C, :RED].set(params["se_w1"]).astype(bf16)
    sw2p = jnp.zeros((Hp, Cp), f32).at[:RED, :C].set(params["se_w2"]).astype(bf16)
    return dict(w1=w1p, b1=b1p, w2=w2p, b2=b2p, sw1=sw1p, sw2=sw2p, C=C)


def _batches_per_block(batch, length, target_rows=1024):
    """Whole batches per block (conv taps never cross a block edge)."""
    if batch * length <= target_rows:
        return batch
    best = 1
    for d in range(1, batch + 1):
        if batch % d == 0 and d * length <= target_rows:
            best = d
    return best


def se_basic_block(x_blc, prep):
    """x_blc: (B, L, C) float32 -> (B, L, C) float32."""
    B, L, C = x_blc.shape
    assert C == prep["C"]
    assert L % 8 == 0, "sequence length must be a multiple of the sublane tile (8)"

    gb = _batches_per_block(B, L)
    rows = gb * L
    grid = (B // gb,)

    x2 = x_blc.reshape(B * L, C).astype(jnp.float32)   # free view, no lane pad

    wspec = lambda shape: pl.BlockSpec(shape, lambda i: (0,) * len(shape))
    out = pl.pallas_call(
        functools.partial(se_basic_block_kernel,
                          batches_per_block=gb, length=L, channels=C),
        out_shape=jax.ShapeDtypeStruct((B * L, C), jnp.float32),
        grid=grid,
        in_specs=[pl.BlockSpec((rows, C), lambda i: (i, 0)),
                  wspec(prep["w1"].shape), wspec(prep["b1"].shape),
                  wspec(prep["w2"].shape), wspec(prep["b2"].shape),
                  wspec(prep["sw1"].shape), wspec(prep["sw2"].shape)],
        out_specs=pl.BlockSpec((rows, C), lambda i: (i, 0)),
        compiler_params=pltpu.CompilerParams(
            dimension_semantics=("parallel",),           # shards rows across TCs on v7x
            vmem_limit_bytes=32 * 1024 * 1024),          # explicit, v7x-safe budget
    )(x2, prep["w1"], prep["b1"], prep["w2"], prep["b2"],
      prep["sw1"], prep["sw2"])

    return out.reshape(B, L, C)


# ----------------------------- pure-JAX reference ----------------------------
def reference(x_blc, params):
    def conv(x, w):  # x: (B, L, Cin), w: (k, Cin, Cout)
        return jax.lax.conv_general_dilated(
            x, w, window_strides=(1,), padding=[(PAD, PAD)],
            dimension_numbers=("NHC", "HIO", "NHC"))

    out = conv(x_blc, params["w1"]) * params["s1"][None] + params["b1"][None]
    out = jnp.maximum(out, 0.0)
    out = conv(out, params["w2"]) * params["s2"][None] + params["b2"][None]
    y = jnp.mean(out, axis=1)                              # (B, C)
    h = jnp.maximum(y @ params["se_w1"], 0.0)
    gate = jax.nn.sigmoid(h @ params["se_w2"])             # (B, C)
    out = out * gate[:, None, :]
    return jnp.maximum(out + x_blc, 0.0)


def _fold_bn(gamma, beta, mean, var, eps=1e-5):
    scale = gamma / jnp.sqrt(var + eps)
    shift = beta - mean * scale
    return scale.reshape(1, -1), shift.reshape(1, -1)


if __name__ == "__main__":
    B, C, L = 2, 32, 16          # inplanes = planes = 32, stride=1, no downsample
    RED = max(C // 16, 1)        # SE reduction=16 -> hidden = 2

    key = jax.random.PRNGKey(0)
    ks = jax.random.split(key, 13)
    n = lambda k, s: jax.random.normal(k, s, jnp.float32)

    # conv weights stored as (k, Cin, Cout); SE Linear weights pre-transposed.
    w1 = 0.1 * n(ks[0], (KSIZE, C, C))
    w2 = 0.1 * n(ks[1], (KSIZE, C, C))
    s1, b1 = _fold_bn(1.0 + 0.1 * n(ks[2], (C,)), 0.1 * n(ks[3], (C,)),
                      0.1 * n(ks[4], (C,)), 1.0 + 0.1 * jnp.abs(n(ks[5], (C,))))
    s2, b2 = _fold_bn(1.0 + 0.1 * n(ks[6], (C,)), 0.1 * n(ks[7], (C,)),
                      0.1 * n(ks[8], (C,)), 1.0 + 0.1 * jnp.abs(n(ks[9], (C,))))
    se_w1 = 0.3 * n(ks[10], (C, RED))
    se_w2 = 0.3 * n(ks[11], (RED, C))

    params = dict(w1=w1, s1=s1, b1=b1, w2=w2, s2=s2, b2=b2,
                  se_w1=se_w1, se_w2=se_w2)

    # PyTorch-style input is NCL (B, C, L); convert to kernel layout BLC.
    x_ncl = n(ks[12], (B, C, L))
    x_blc = jnp.transpose(x_ncl, (0, 2, 1))

    prep = prepare_params(params)                 # one-time, hoisted off the hot path
    fwd = jax.jit(lambda x: se_basic_block(x, prep))
    out_blc = jax.block_until_ready(fwd(x_blc))
    ref_blc = reference(x_blc, params)

    assert out_blc.shape == (B, L, C)
    err = jnp.abs(out_blc - ref_blc)
    max_err = float(jnp.max(err))
    mean_err = float(jnp.mean(err))
    # bf16 MXU operands (per perf review) vs. an f32 reference -> loosened tolerance.
    assert max_err < 5e-2 and mean_err < 5e-3, (max_err, mean_err)

    print("KERNEL_OK")
</pallas_src>

<mosaic_0001>
module attributes {stable_mosaic.version = 11 : i64} {
  func.func @se_basic_block_kernel(%arg0: i32, %arg1: memref<32x32xf32, #tpu.memory_space<vmem>>, %arg2: memref<224x128xbf16, #tpu.memory_space<vmem>>, %arg3: memref<1x128xf32, #tpu.memory_space<vmem>>, %arg4: memref<224x128xbf16, #tpu.memory_space<vmem>>, %arg5: memref<1x128xf32, #tpu.memory_space<vmem>>, %arg6: memref<128x8xbf16, #tpu.memory_space<vmem>>, %arg7: memref<8x128xbf16, #tpu.memory_space<vmem>>, %arg8: memref<32x32xf32, #tpu.memory_space<vmem>>) attributes {dimension_semantics = [#tpu.dimension_semantics<parallel>], iteration_bounds = array<i64: 1>, scalar_prefetch = 0 : i64, scratch_operands = 0 : i64, tpu.core_type = #tpu.core_type<tc>, window_params = [{transform_indices = @transform_0, window_bounds = array<i64: 32, 32>}, {pipeline_mode = #tpu.pipeline_mode<synchronous>, transform_indices = @transform_1, window_bounds = array<i64: 224, 128>}, {pipeline_mode = #tpu.pipeline_mode<synchronous>, transform_indices = @transform_2, window_bounds = array<i64: 1, 128>}, {pipeline_mode = #tpu.pipeline_mode<synchronous>, transform_indices = @transform_3, window_bounds = array<i64: 224, 128>}, {pipeline_mode = #tpu.pipeline_mode<synchronous>, transform_indices = @transform_4, window_bounds = array<i64: 1, 128>}, {pipeline_mode = #tpu.pipeline_mode<synchronous>, transform_indices = @transform_5, window_bounds = array<i64: 128, 8>}, {pipeline_mode = #tpu.pipeline_mode<synchronous>, transform_indices = @transform_6, window_bounds = array<i64: 8, 128>}, {transform_indices = @transform_7, window_bounds = array<i64: 32, 32>}]} {
    %c0 = arith.constant 0 : index
    %c0_0 = arith.constant 0 : index
    %0 = vector.load %arg1[%c0, %c0_0] : memref<32x32xf32, #tpu.memory_space<vmem>>, vector<32x32xf32>
    %1 = tpu.iota {dimensions = array<i32: 1>} : vector<2x16x32xi32>
    %2 = vector.shape_cast %1 : vector<2x16x32xi32> to vector<32x32xi32>
    %c3_i32 = arith.constant 3 : i32
    %3 = vector.broadcast %c3_i32 : i32 to vector<32x32xi32>
    %4 = arith.cmpi sge, %2, %3 : vector<32x32xi32>
    %c2_i32 = arith.constant 2 : i32
    %5 = vector.broadcast %c2_i32 : i32 to vector<32x32xi32>
    %6 = arith.cmpi sge, %2, %5 : vector<32x32xi32>
    %c1_i32 = arith.constant 1 : i32
    %7 = vector.broadcast %c1_i32 : i32 to vector<32x32xi32>
    %8 = arith.cmpi sge, %2, %7 : vector<32x32xi32>
    %c15_i32 = arith.constant 15 : i32
    %9 = vector.broadcast %c15_i32 : i32 to vector<32x32xi32>
    %10 = arith.cmpi slt, %2, %9 : vector<32x32xi32>
    %c14_i32 = arith.constant 14 : i32
    %11 = vector.broadcast %c14_i32 : i32 to vector<32x32xi32>
    %12 = arith.cmpi slt, %2, %11 : vector<32x32xi32>
    %c13_i32 = arith.constant 13 : i32
    %13 = vector.broadcast %c13_i32 : i32 to vector<32x32xi32>
    %14 = arith.cmpi slt, %2, %13 : vector<32x32xi32>
    %c3_i32_1 = arith.constant 3 : i32
    %15 = tpu.dynamic_rotate %0 by %c3_i32_1 dim 0 : vector<32x32xf32>, i32 -> vector<32x32xf32>
    %cst = arith.constant 0.000000e+00 : f32
    %16 = vector.broadcast %cst : f32 to vector<32x32xf32>
    %17 = arith.select %4, %15, %16 : vector<32x32xi1>, vector<32x32xf32>
    %c2_i32_2 = arith.constant 2 : i32
    %18 = tpu.dynamic_rotate %0 by %c2_i32_2 dim 0 : vector<32x32xf32>, i32 -> vector<32x32xf32>
    %cst_3 = arith.constant 0.000000e+00 : f32
    %19 = vector.broadcast %cst_3 : f32 to vector<32x32xf32>
    %20 = arith.select %6, %18, %19 : vector<32x32xi1>, vector<32x32xf32>
    %c1_i32_4 = arith.constant 1 : i32
    %21 = tpu.dynamic_rotate %0 by %c1_i32_4 dim 0 : vector<32x32xf32>, i32 -> vector<32x32xf32>
    %cst_5 = arith.constant 0.000000e+00 : f32
    %22 = vector.broadcast %cst_5 : f32 to vector<32x32xf32>
    %23 = arith.select %8, %21, %22 : vector<32x32xi1>, vector<32x32xf32>
    %c31_i32 = arith.constant 31 : i32
    %24 = tpu.dynamic_rotate %0 by %c31_i32 dim 0 : vector<32x32xf32>, i32 -> vector<32x32xf32>
    %cst_6 = arith.constant 0.000000e+00 : f32
    %25 = vector.broadcast %cst_6 : f32 to vector<32x32xf32>
    %26 = arith.select %10, %24, %25 : vector<32x32xi1>, vector<32x32xf32>
    %c30_i32 = arith.constant 30 : i32
    %27 = tpu.dynamic_rotate %0 by %c30_i32 dim 0 : vector<32x32xf32>, i32 -> vector<32x32xf32>
    %cst_7 = arith.constant 0.000000e+00 : f32
    %28 = vector.broadcast %cst_7 : f32 to vector<32x32xf32>
    %29 = arith.select %12, %27, %28 : vector<32x32xi1>, vector<32x32xf32>
    %c29_i32 = arith.constant 29 : i32
    %30 = tpu.dynamic_rotate %0 by %c29_i32 dim 0 : vector<32x32xf32>, i32 -> vector<32x32xf32>
    %cst_8 = arith.constant 0.000000e+00 : f32
    %31 = vector.broadcast %cst_8 : f32 to vector<32x32xf32>
    %32 = arith.select %14, %30, %31 : vector<32x32xi1>, vector<32x32xf32>
    %33 = tpu.concatenate %17, %20, %23, %0, %26, %29, %32 in 1 : vector<32x32xf32>, vector<32x32xf32>, vector<32x32xf32>, vector<32x32xf32>, vector<32x32xf32>, vector<32x32xf32>, vector<32x32xf32> -> vector<32x224xf32>
    %34 = arith.truncf %33 : vector<32x224xf32> to vector<32x224xbf16>
    %c0_9 = arith.constant 0 : index
    %c0_10 = arith.constant 0 : index
    %35 = vector.load %arg2[%c0_9, %c0_10] : memref<224x128xbf16, #tpu.memory_space<vmem>>, vector<224x128xbf16>
    %cst_11 = arith.constant dense<0.000000e+00> : vector<32x128xf32>
    %36 = tpu.matmul %34, %35, %cst_11 {dimension_numbers = #tpu.dot_dimension_numbers<[1], [0], [0], [1], [0, 0, 1, 1], [], []>} : vector<32x224xbf16>, vector<224x128xbf16>, vector<32x128xf32> -> vector<32x128xf32>
    %c0_12 = arith.constant 0 : index
    %c0_13 = arith.constant 0 : index
    %37 = vector.load %arg3[%c0_12, %c0_13] : memref<1x128xf32, #tpu.memory_space<vmem>>, vector<1x128xf32>
    %38 = vector.broadcast %37 : vector<1x128xf32> to vector<32x128xf32>
    %39 = arith.addf %36, %38 : vector<32x128xf32>
    %cst_14 = arith.constant 0.000000e+00 : f32
    %40 = vector.broadcast %cst_14 : f32 to vector<32x128xf32>
    %41 = arith.maximumf %39, %40 : vector<32x128xf32>
    %42 = vector.extract_strided_slice %41 {offsets = [0, 0], sizes = [32, 32], strides = [1, 1]} : vector<32x128xf32> to vector<32x32xf32>
    %c3_i32_15 = arith.constant 3 : i32
    %43 = tpu.dynamic_rotate %42 by %c3_i32_15 dim 0 : vector<32x32xf32>, i32 -> vector<32x32xf32>
    %cst_16 = arith.constant 0.000000e+00 : f32
    %44 = vector.broadcast %cst_16 : f32 to vector<32x32xf32>
    %45 = arith.select %4, %43, %44 : vector<32x32xi1>, vector<32x32xf32>
    %c2_i32_17 = arith.constant 2 : i32
    %46 = tpu.dynamic_rotate %42 by %c2_i32_17 dim 0 : vector<32x32xf32>, i32 -> vector<32x32xf32>
    %cst_18 = arith.constant 0.000000e+00 : f32
    %47 = vector.broadcast %cst_18 : f32 to vector<32x32xf32>
    %48 = arith.select %6, %46, %47 : vector<32x32xi1>, vector<32x32xf32>
    %c1_i32_19 = arith.constant 1 : i32
    %49 = tpu.dynamic_rotate %42 by %c1_i32_19 dim 0 : vector<32x32xf32>, i32 -> vector<32x32xf32>
    %cst_20 = arith.constant 0.000000e+00 : f32
    %50 = vector.broadcast %cst_20 : f32 to vector<32x32xf32>
    %51 = arith.select %8, %49, %50 : vector<32x32xi1>, vector<32x32xf32>
    %c31_i32_21 = arith.constant 31 : i32
    %52 = tpu.dynamic_rotate %42 by %c31_i32_21 dim 0 : vector<32x32xf32>, i32 -> vector<32x32xf32>
    %cst_22 = arith.constant 0.000000e+00 : f32
    %53 = vector.broadcast %cst_22 : f32 to vector<32x32xf32>
    %54 = arith.select %10, %52, %53 : vector<32x32xi1>, vector<32x32xf32>
    %c30_i32_23 = arith.constant 30 : i32
    %55 = tpu.dynamic_rotate %42 by %c30_i32_23 dim 0 : vector<32x32xf32>, i32 -> vector<32x32xf32>
    %cst_24 = arith.constant 0.000000e+00 : f32
    %56 = vector.broadcast %cst_24 : f32 to vector<32x32xf32>
    %57 = arith.select %12, %55, %56 : vector<32x32xi1>, vector<32x32xf32>
    %c29_i32_25 = arith.constant 29 : i32
    %58 = tpu.dynamic_rotate %42 by %c29_i32_25 dim 0 : vector<32x32xf32>, i32 -> vector<32x32xf32>
    %cst_26 = arith.constant 0.000000e+00 : f32
    %59 = vector.broadcast %cst_26 : f32 to vector<32x32xf32>
    %60 = arith.select %14, %58, %59 : vector<32x32xi1>, vector<32x32xf32>
    %61 = tpu.concatenate %45, %48, %51, %42, %54, %57, %60 in 1 : vector<32x32xf32>, vector<32x32xf32>, vector<32x32xf32>, vector<32x32xf32>, vector<32x32xf32>, vector<32x32xf32>, vector<32x32xf32> -> vector<32x224xf32>
    %62 = arith.truncf %61 : vector<32x224xf32> to vector<32x224xbf16>
    %c0_27 = arith.constant 0 : index
    %c0_28 = arith.constant 0 : index
    %63 = vector.load %arg4[%c0_27, %c0_28] : memref<224x128xbf16, #tpu.memory_space<vmem>>, vector<224x128xbf16>
    %cst_29 = arith.constant dense<0.000000e+00> : vector<32x128xf32>
    %64 = tpu.matmul %62, %63, %cst_29 {dimension_numbers = #tpu.dot_dimension_numbers<[1], [0], [0], [1], [0, 0, 1, 1], [], []>} : vector<32x224xbf16>, vector<224x128xbf16>, vector<32x128xf32> -> vector<32x128xf32>
    %c0_30 = arith.constant 0 : index
    %c0_31 = arith.constant 0 : index
    %65 = vector.load %arg5[%c0_30, %c0_31] : memref<1x128xf32, #tpu.memory_space<vmem>>, vector<1x128xf32>
    %66 = vector.broadcast %65 : vector<1x128xf32> to vector<32x128xf32>
    %67 = arith.addf %64, %66 : vector<32x128xf32>
    %68 = vector.shape_cast %67 : vector<32x128xf32> to vector<2x16x128xf32>
    %cst_32 = arith.constant dense<0.000000e+00> : vector<2x128xf32>
    %69 = vector.multi_reduction <add>, %68, %cst_32 [1] : vector<2x16x128xf32> to vector<2x128xf32>
    %cst_33 = arith.constant 6.250000e-02 : f32
    %70 = vector.broadcast %cst_33 : f32 to vector<2x128xf32>
    %71 = arith.mulf %69, %70 : vector<2x128xf32>
    %72 = arith.truncf %71 : vector<2x128xf32> to vector<2x128xbf16>
    %c0_34 = arith.constant 0 : index
    %c0_35 = arith.constant 0 : index
    %73 = vector.load %arg6[%c0_34, %c0_35] : memref<128x8xbf16, #tpu.memory_space<vmem>>, vector<128x8xbf16>
    %cst_36 = arith.constant dense<0.000000e+00> : vector<2x8xf32>
    %74 = tpu.matmul %72, %73, %cst_36 {dimension_numbers = #tpu.dot_dimension_numbers<[1], [0], [0], [1], [0, 0, 1, 1], [], []>} : vector<2x128xbf16>, vector<128x8xbf16>, vector<2x8xf32> -> vector<2x8xf32>
    %cst_37 = arith.constant 0.000000e+00 : f32
    %75 = vector.broadcast %cst_37 : f32 to vector<2x8xf32>
    %76 = arith.maximumf %74, %75 : vector<2x8xf32>
    %77 = arith.truncf %76 : vector<2x8xf32> to vector<2x8xbf16>
    %c0_38 = arith.constant 0 : index
    %c0_39 = arith.constant 0 : index
    %78 = vector.load %arg7[%c0_38, %c0_39] : memref<8x128xbf16, #tpu.memory_space<vmem>>, vector<8x128xbf16>
    %cst_40 = arith.constant dense<0.000000e+00> : vector<2x128xf32>
    %79 = tpu.matmul %77, %78, %cst_40 {dimension_numbers = #tpu.dot_dimension_numbers<[1], [0], [0], [1], [0, 0, 1, 1], [], []>} : vector<2x8xbf16>, vector<8x128xbf16>, vector<2x128xf32> -> vector<2x128xf32>
    %80 = arith.negf %79 : vector<2x128xf32>
    %81 = math.exp %80 : vector<2x128xf32>
    %cst_41 = arith.constant 1.000000e+00 : f32
    %82 = vector.broadcast %cst_41 : f32 to vector<2x128xf32>
    %83 = arith.addf %82, %81 : vector<2x128xf32>
    %84 = arith.divf %82, %83 : vector<2x128xf32>
    %85 = vector.extract_strided_slice %68 {offsets = [0, 0, 0], sizes = [2, 16, 32], strides = [1, 1, 1]} : vector<2x16x128xf32> to vector<2x16x32xf32>
    %86 = vector.extract_strided_slice %84 {offsets = [0, 0], sizes = [2, 32], strides = [1, 1]} : vector<2x128xf32> to vector<2x32xf32>
    %87 = vector.shape_cast %86 : vector<2x32xf32> to vector<2x1x32xf32>
    %88 = vector.broadcast %87 : vector<2x1x32xf32> to vector<2x16x32xf32>
    %89 = arith.mulf %85, %88 : vector<2x16x32xf32>
    %90 = vector.shape_cast %0 : vector<32x32xf32> to vector<2x16x32xf32>
    %91 = arith.addf %89, %90 : vector<2x16x32xf32>
    %cst_42 = arith.constant 0.000000e+00 : f32
    %92 = vector.broadcast %cst_42 : f32 to vector<2x16x32xf32>
    %93 = arith.maximumf %91, %92 : vector<2x16x32xf32>
    %94 = vector.shape_cast %93 : vector<2x16x32xf32> to vector<32x32xf32>
    %c0_43 = arith.constant 0 : index
    %c0_44 = arith.constant 0 : index
    %95 = vector.load %arg8[%c0_43, %c0_44] : memref<32x32xf32, #tpu.memory_space<vmem>>, vector<32x32xf32>
    tpu.vector_store %arg8[%c0_43, %c0_44], %94 {strides = array<i32>} : memref<32x32xf32, #tpu.memory_space<vmem>>, vector<32x32xf32>,
    return
  }
  func.func @transform_0(%arg0: i32) -> (i32, i32) {
    %c0_i32 = arith.constant 0 : i32
    %c0_i32_0 = arith.constant 0 : i32
    return %arg0, %c0_i32 : i32, i32
  }
  func.func @transform_1(%arg0: i32) -> (i32, i32) {
    %c0_i32 = arith.constant 0 : i32
    %c0_i32_0 = arith.constant 0 : i32
    %c0_i32_1 = arith.constant 0 : i32
    return %c0_i32, %c0_i32_0 : i32, i32
  }
  func.func @transform_2(%arg0: i32) -> (i32, i32) {
    %c0_i32 = arith.constant 0 : i32
    %c0_i32_0 = arith.constant 0 : i32
    %c0_i32_1 = arith.constant 0 : i32
    return %c0_i32, %c0_i32_0 : i32, i32
  }
  func.func @transform_3(%arg0: i32) -> (i32, i32) {
    %c0_i32 = arith.constant 0 : i32
    %c0_i32_0 = arith.constant 0 : i32
    %c0_i32_1 = arith.constant 0 : i32
    return %c0_i32, %c0_i32_0 : i32, i32
  }
  func.func @transform_4(%arg0: i32) -> (i32, i32) {
    %c0_i32 = arith.constant 0 : i32
    %c0_i32_0 = arith.constant 0 : i32
    %c0_i32_1 = arith.constant 0 : i32
    return %c0_i32, %c0_i32_0 : i32, i32
  }
  func.func @transform_5(%arg0: i32) -> (i32, i32) {
    %c0_i32 = arith.constant 0 : i32
    %c0_i32_0 = arith.constant 0 : i32
    %c0_i32_1 = arith.constant 0 : i32
    return %c0_i32, %c0_i32_0 : i32, i32
  }
  func.func @transform_6(%arg0: i32) -> (i32, i32) {
    %c0_i32 = arith.constant 0 : i32
    %c0_i32_0 = arith.constant 0 : i32
    %c0_i32_1 = arith.constant 0 : i32
    return %c0_i32, %c0_i32_0 : i32, i32
  }
  func.func @transform_7(%arg0: i32) -> (i32, i32) {
    %c0_i32 = arith.constant 0 : i32
    %c0_i32_0 = arith.constant 0 : i32
    return %arg0, %c0_i32 : i32, i32
  }
}

</mosaic_0001>

<bundles_post_ra>
// kernel: _lambda_.1
= control target key start
LH: loop header
LB: loop body
LE: loop exit
PB: predicated region body
PF: predicated region fallthrough
CT: control target
= control target key end

     0   :  { %12 = vsyncpa [#allocation3], 0  ;;  %s1870_s0 = inlined_call_operand.hbm [shape: f32[32,32], index: 0, kind: input, shape index: {}]   ;;  %s1871_s1 = inlined_call_operand.hbm [shape: bf16[224,128], index: 1, kind: input, shape index: {}]   ;;  %s1872_s2 = inlined_call_operand.vmem [shape: f32[1,128], index: 2, kind: input, shape index: {}]   ;;  %s1873_s3 = inlined_call_operand.hbm [shape: bf16[224,128], index: 3, kind: input, shape index: {}]   ;;  %s1874_s4 = inlined_call_operand.vmem [shape: f32[1,128], index: 4, kind: input, shape index: {}]   ;;  %s1875_s5 = inlined_call_operand.hbm [shape: bf16[128,8], index: 5, kind: input, shape index: {}]   ;;  %s1876_s6 = inlined_call_operand.vmem [shape: bf16[8,128], index: 6, kind: input, shape index: {}]   ;;  %s1877_s7 = inlined_call_operand.hbm [shape: f32[32,32], index: 7, kind: output, shape index: {}]  }
   0x1   :  { %13 = vsyncpa [#allocation6], 0 }
   0x2   :  { %14 = vsyncpa [#allocation9], 0 }
   0x3   :  { %15 = vsyncpa [#allocation4], 0  ;;  %s1418_s24 = smov [#allocation5]  }
   0x4   :  { %s33_s25 = sshll.u32 %s1418_s24, 4  ;;  %s34_s25 = int_to_ptr.vmem [resolvable:$true] %s33_s25 }
   0x5   :  { %s1318_s26 = scalar_lea.vmem %s34_s25, 1792  ;;  %p1323_p1 = scmp.lt.s32.totalorder %s34_s25, %s34_s25 }
   0x6   :  { %p1319_p0 = scmp.ne.s32.totalorder %s34_s25, %s1318_s26  ;;  %p1324_p2 = scmp.lt.s32.totalorder %s1318_s26, %s1318_s26 }
   0x8   :  { %p1325_p3 = por %p1324_p2, %p1323_p1 }
   0xa   :  { %p1326_p4 = pnand %p1325_p3, %p1319_p0 }
   0xc   :  { %1329 = shalt.err (!%p1326_p4)
}
   0xd   :  { %s1419_s27 = smov 64   ;;  %s1420_s28 = smov 4  }
   0xe   :  { %39 = dma.hbm_to_vmem [thread:$0]  %s1871_s1, 1792, %s34_s25, [#allocation6], %s1419_s27, %s1419_s27, %s1420_s28  }
   0xf   :  { %s1421_s8 = smov [#allocation2]  }
  0x10   :  { %s21_s9 = sshll.u32 %s1421_s8, 4  ;;  %s22_s9 = int_to_ptr.vmem [resolvable:$true] %s21_s9 }
  0x11   :  { %s1338_s10 = scalar_lea.vmem %s22_s9, 512  ;;  %p1343_p6 = scmp.lt.s32.totalorder %s22_s9, %s22_s9 }
  0x12   :  { %p1339_p5 = scmp.ne.s32.totalorder %s22_s9, %s1338_s10  ;;  %p1344_p7 = scmp.lt.s32.totalorder %s1338_s10, %s1338_s10 }
  0x14   :  { %p1345_p8 = por %p1344_p7, %p1343_p6 }
  0x16   :  { %p1346_p9 = pnand %p1345_p8, %p1339_p5 }
  0x18   :  { %1349 = shalt.err (!%p1346_p9)
}
  0x19   :  { %s1422_s11 = smov 128   ;;  %s1423_s12 = smov 8  }
  0x1a   :  { %27 = dma.hbm_to_vmem [thread:$0]  %s1870_s0, 512, %s22_s9, [#allocation3], %s1422_s11, %s1422_s11, %s1423_s12  }
  0x1b   :  { %s1424_s1 = smov [#allocation7]   ;;  %s1425_s16 = smov [#allocation8]  }
  0x1c   :  { %s47_s15 = sshll.u32 %s1424_s1, 4  ;;  %s61_s17 = sshll.u32 %s1425_s16, 4  ;;  %s48_s15 = int_to_ptr.vmem [resolvable:$true] %s47_s15  ;;  %s62_s17 = int_to_ptr.vmem [resolvable:$true] %s61_s17 }
  0x1d   :  { %s1358_s18 = scalar_lea.vmem %s48_s15, 1792  ;;  %p1363_p11 = scmp.lt.s32.totalorder %s48_s15, %s48_s15 }
  0x1e   :  { %p1359_p10 = scmp.ne.s32.totalorder %s48_s15, %s1358_s18  ;;  %p1364_p12 = scmp.lt.s32.totalorder %s1358_s18, %s1358_s18 }
  0x20   :  { %p1365_p13 = por %p1364_p12, %p1363_p11 }
  0x22   :  { %p1366_p0 = pnand %p1365_p13, %p1359_p10 }
  0x24   :  { %1369 = shalt.err (!%p1366_p0)
}
  0x25   :  { %53 = dma.hbm_to_vmem [thread:$0]  %s1873_s3, 1792, %s48_s15, [#allocation6], %s1419_s27, %s1419_s27, %s1420_s28  }
  0x26   :  { %s1378_s0 = scalar_lea.vmem %s62_s17, 1024  ;;  %p1383_p2 = scmp.lt.s32.totalorder %s62_s17, %s62_s17 }
  0x27   :  { %p1379_p1 = scmp.ne.s32.totalorder %s62_s17, %s1378_s0  ;;  %p1384_p3 = scmp.lt.s32.totalorder %s1378_s0, %s1378_s0 }
  0x29   :  { %p1385_p4 = por %p1384_p3, %p1383_p2 }
  0x2b   :  { %p1386_p5 = pnand %p1385_p4, %p1379_p1 }
  0x2d   :  { %1389 = shalt.err (!%p1386_p5)
}
  0x2e   :  { %67 = dma.hbm_to_vmem [thread:$0]  %s1875_s5, 1024, %s62_s17, [#allocation9], %s1419_s27, %s1419_s27, %s1420_s28  }
  0x2f   :  { %1410 = dma.done.wait [#allocation3], 512  }
  0x30   :  { %1411 = vsyncadd [#allocation3], 4294966784 }
  0x31   :  { %1412 = dma.done.wait [#allocation6], 3584  }
  0x32   :  { %1413 = vsyncadd [#allocation6], 4294963712 }
  0x33   :  { %1414 = dma.done.wait [#allocation9], 1024  }
  0x34   :  { %1415 = vsyncadd [#allocation9], 4294966272  ;;  %v87_v0 = vlaneseq  ;;  %v1426_v1 = vmov 0   ;;  %v1509_v4 = vld [vmem:[#allocation2] sm:$0xff]  ;;  %v1511_v5 = vld [vmem:[#allocation2 + $0x8] sm:$0xff]  ;;  %s1427_s3 = smov 32  }
  0x35   :  { %412 = vmatprep.subr.bf16.mxu0 %v1426_v1  ;;  %766 = vmatprep.subr.bf16.mxu1 %v1426_v1  ;;  %v1513_v6 = vld [vmem:[#allocation2 + $0x18] sm:$0xff]  ;;  %v128_v7 = vrot.slane %v1509_v4, 7  ;;  %v129_v8 = vrot.slane %v1511_v5, 7  ;;  %v115_v10 = vrot.slane %v1509_v4, 6  ;;  %v1522_v11 = vld [vmem:[#allocation2 + $0x10] sm:$0xff]  ;;  %v116_v13 = vrot.slane %v1511_v5, 6 }
  0x36   :  { %v1499_v2 = vshrl.u32 %v87_v0, 7  ;;  %v131_v9 = vrot.slane %v1513_v6, 7  ;;  %v1266_v12 = vld [vmem:[#allocation5 + $0x38] sm:$0xff]   ;;  %v118_v14 = vrot.slane %v1513_v6, 6  ;;  %v167_v15 = vrot.slane %v1509_v4, 3  ;;  %v1267_v25 = vld [vmem:[#allocation5 + $0x30] sm:$0xff]  }
  0x37   :  { %v168_v16 = vrot.slane %v1511_v5, 3  ;;  %v169_v19 = vrot.slane %v1522_v11, 3  ;;  %v154_v20 = vrot.slane %v1509_v4, 2  ;;  %413 = vmatpush1.bf16.msra.mxu0 %v1266_v12  ;;  %v155_v29 = vrot.slane %v1511_v5, 2  ;;  %v1268_v37 = vld [vmem:[#allocation5 + $0x28] sm:$0xff]   ;;  %v1269_v49 = vld [vmem:[#allocation5 + $0x20] sm:$0xff]  }
  0x38   :  { %vm94_vm0 = vcmp.ge.s32.totalorder %v1499_v2, 1  ;;  %v1503_v3 = vadd.s32 8, %v1499_v2  ;;  %vm132_vm1 = vcmp.lt.s32.totalorder %v1499_v2, 1  ;;  %vm92_vm2 = vcmp.ge.s32.totalorder %v1499_v2, 2  ;;  %414 = vmatprep.subr.bf16.mxu0 %v1426_v1  ;;  %v1270_v56 = vld [vmem:[#allocation5 + $0x18] sm:$0xff]   ;;  %s1428_s5 = smov 96  }
  0x39   :  { %vm119_vm3 = vcmp.lt.s32.totalorder %v1499_v2, 2  ;;  %vm171_vm4 = vcmp.lt.s32.totalorder %v1499_v2, 5  ;;  %vm158_vm7 = vcmp.lt.s32.totalorder %v1499_v2, 6  ;;  %v135_v17 = vsel %vm132_vm1, %v128_v7, %v129_v8  ;;  %v1271_v62 = vld [vmem:[#allocation5 + $0x10] sm:$0xff]   ;;  %v1272_v0 = vld [vmem:[#allocation5 + $0x8] sm:$0xff]  }
  0x3a   :  { %vm101_vm5 = vcmp.lt.s32.totalorder %v1503_v3, 13  ;;  %vm99_vm6 = vcmp.lt.s32.totalorder %v1503_v3, 14  ;;  %v136_v18 = vsel %vm132_vm1, %v131_v9, %v128_v7  ;;  %v122_v22 = vsel %vm119_vm3, %v115_v10, %v116_v13  ;;  %v1273_v7 = vld [vmem:[#allocation5] sm:$0xff]   ;;  %v1277_v12 = vld [vmem:[#allocation5 + $0x50] sm:$0xff]  }
  0x3b   :  { %v137_v21 = vsel %vm94_vm0, %v136_v18, 0.0  ;;  %v123_v23 = vsel %vm119_vm3, %v118_v14, %v115_v10  ;;  %v174_v24 = vsel %vm171_vm4, %v167_v15, %v168_v16  ;;  %v173_v28 = vsel %vm171_vm4, %v168_v16, %v169_v19  ;;  %415 = vmatpush1.bf16.msra.mxu0 %v1267_v25  ;;  %v1276_v10 = vld [vmem:[#allocation5 + $0x58] sm:$0xff]  }
  0x3c   :  { %v1181_v26 = vpack.i.bf16 %v135_v17, %v137_v21  ;;  %v124_v27 = vsel %vm92_vm2, %v123_v23, 0.0  ;;  %v177_v31 = vsel %vm101_vm5, %v173_v28, 0.0  ;;  %v156_v32 = vrot.slane %v1522_v11, 2  ;;  %416 = vmatprep.subr.bf16.mxu0 %v1426_v1 }
  0x3d   :  { %v1166_v30 = vpack.i.bf16 %v122_v22, %v124_v27  ;;  %v117_v33 = vrot.slane %v1522_v11, 6  ;;  %v1186_v34 = vpack.i.bf16 %v177_v31, %v174_v24  ;;  %v161_v35 = vsel %vm158_vm7, %v154_v20, %v155_v29 }
  0x3e   :  { %1182 = vrot.lane.b32.xlu1 %v1181_v26, %s1419_s27  ;;  %v130_v36 = vrot.slane %v1522_v11, 7  ;;  %v160_v38 = vsel %vm158_vm7, %v155_v29, %v156_v32  ;;  %v157_v41 = vrot.slane %v1513_v6, 2  ;;  %v170_v48 = vrot.slane %v1513_v6, 3 }
  0x3f   :  { %1167 = vrot.lane.b32.xlu0 %v1166_v30, %s1427_s3  ;;  %v120_v39 = vsel %vm119_vm3, %v117_v33, %v118_v14  ;;  %v121_v40 = vsel %vm119_vm3, %v116_v13, %v117_v33  ;;  %v164_v42 = vsel %vm99_vm6, %v160_v38, 0.0  ;;  %417 = vmatpush1.bf16.msra.mxu0 %v1268_v37  ;;  %v1176_v50 = vpack.i.bf16 %v1511_v5, %v1509_v4  ;;  %v1278_v13 = vld [vmem:[#allocation5 + $0x48] sm:$0xff]   ;;  %v1279_v14 = vld [vmem:[#allocation5 + $0x40] sm:$0xff]  }
  0x40   :  { %v126_v43 = vsel %vm92_vm2, %v121_v40, 0.0  ;;  %v134_v44 = vsel %vm132_vm1, %v129_v8, %v130_v36  ;;  %v1171_v45 = vpack.i.bf16 %v164_v42, %v161_v35  ;;  %v162_v47 = vsel %vm158_vm7, %v157_v41, %v154_v20  ;;  %418 = vmatprep.subr.bf16.mxu0 %v1426_v1  ;;  %v1274_v8 = vld [vmem:[#allocation5 + $0x68] sm:$0xff]  }
  0x41   :  { %v1191_v46 = vpack.i.bf16 %v120_v39, %v126_v43  ;;  %v133_v51 = vsel %vm132_vm1, %v130_v36, %v131_v9  ;;  %v139_v52 = vsel %vm94_vm0, %v134_v44, 0.0  ;;  %v166_v53 = vsel %vm99_vm6, %v162_v47, 0.0  ;;  %v1275_v9 = vld [vmem:[#allocation5 + $0x60] sm:$0xff]  }
  0x42   :  { %1187 = vrot.lane.b32.xlu1 %v1186_v34, %s1419_s27  ;;  %v159_v54 = vsel %vm158_vm7, %v156_v32, %v157_v41  ;;  %v175_v55 = vsel %vm171_vm4, %v170_v48, %v167_v15  ;;  %v1201_v57 = vpack.i.bf16 %v133_v51, %v139_v52  ;;  %v172_v59 = vsel %vm171_vm4, %v169_v19, %v170_v48 }
  0x43   :  { %1172 = vrot.lane.b32.xlu0 %v1171_v45, %s1427_s3  ;;  %419 = vmatpush1.bf16.msra.mxu0 %v1269_v49  ;;  %v1196_v58 = vpack.i.bf16 %v166_v53, %v159_v54  ;;  %v179_v60 = vsel %vm101_vm5, %v175_v55, 0.0  ;;  %v1211_v61 = vpack.i.bf16 %v1513_v6, %v1522_v11  ;;  %v105_v15 = vrot.slane %v1513_v6, 5 }
  0x44   :  { %420 = vmatprep.subr.bf16.mxu0 %v1426_v1  ;;  %v1206_v63 = vpack.i.bf16 %v179_v60, %v172_v59  ;;  %v102_v16 = vrot.slane %v1509_v4, 5  ;;  %vm106_vm8 = vcmp.lt.s32.totalorder %v1499_v2, 3  ;;  %v142_v17 = vrot.slane %v1511_v5, 1 }
  0x45   :  { %v143_v18 = vrot.slane %v1522_v11, 1  ;;  %vm145_vm9 = vcmp.lt.s32.totalorder %v1499_v2, 7  ;;  %v103_v20 = vrot.slane %v1511_v5, 5  ;;  %vm90_vm10 = vcmp.ge.s32.totalorder %v1499_v2, 3 }
  0x46   :  { %1192 = vrot.lane.b32.xlu1 %v1191_v46, %s1427_s3  ;;  %v110_v22 = vsel %vm106_vm8, %v105_v15, %v102_v16  ;;  %v141_v23 = vrot.slane %v1509_v4, 1  ;;  %vm97_vm11 = vcmp.lt.s32.totalorder %v1503_v3, 15  ;;  %vm260_vm12 = vcmask 261120  }
  0x47   :  { %1177 = vrot.lane.b32.xlu0 %v1176_v50, %s1428_s5  ;;  %421 = vmatpush1.bf16.msra.mxu0 %v1270_v56  ;;  %v147_v24 = vsel %vm145_vm9, %v142_v17, %v143_v18  ;;  %v109_v27 = vsel %vm106_vm8, %v102_v16, %v103_v20  ;;  %v111_v5 = vsel %vm90_vm10, %v110_v22, 0.0  ;;  %v104_v37 = vrot.slane %v1522_v11, 5 }
  0x48   :  { %422 = vmatprep.subr.bf16.mxu0 %v1426_v1  ;;  %v148_v4 = vsel %vm145_vm9, %v141_v23, %v142_v17  ;;  %v151_v32 = vsel %vm97_vm11, %v147_v24, 0.0  ;;  %vm265_vm13 = vcmask 523264   ;;  %vm270_vm14 = vcmask 785408  }
  0x49   :  { %v144_v46 = vrot.slane %v1513_v6, 1  ;;  %v108_v49 = vsel %vm106_vm8, %v103_v20, %v104_v37  ;;  %v107_v59 = vsel %vm106_vm8, %v104_v37, %v105_v15  ;;  %v1289_v37 = vld [vmem:[#allocation7 + $0x60] sm:$0xff]   ;;  %vm1430_vm15 = vmmov 0  }
  0x4a   :  { %1202 = vrot.lane.b32.xlu1 %v1201_v57, %s1419_s27  ;;  %v113_v60 = vsel %vm90_vm10, %v108_v49, 0.0 }
  0x4b   :  { %1197 = vrot.lane.b32.xlu0 %v1196_v58, %s1427_s3  ;;  %423 = vmatpush1.bf16.msra.mxu0 %v1271_v62  ;;  %v149_v6 = vsel %vm145_vm9, %v144_v46, %v141_v23 }
  0x4c   :  { %424 = vmatprep.subr.bf16.mxu0 %v1426_v1 }
  0x4e   :  { %1212 = vrot.lane.b32.xlu1 %v1211_v61, %s1428_s5 }
  0x4f   :  { %1207 = vrot.lane.b32.xlu0 %v1206_v63, %s1419_s27  ;;  %425 = vmatpush1.bf16.msra.mxu0 %v1272_v0 }
  0x50   :  { %426 = vmatprep.subr.bf16.mxu0 %v1426_v1 }
  0x53   :  { %427 = vmatpush1.bf16.msra.mxu0 %v1273_v7  ;;  %v146_v7 = vsel %vm145_vm9, %v143_v18, %v144_v46  ;;  %v1291_v46 = vld [vmem:[#allocation7 + $0x50] sm:$0xff]  }
  0x54   :  { %432 = vmatprep.subr.bf16.mxu0 %v1426_v1 }
  0x57   :  { %433 = vmatpush2.bf16.msra.mxu0 %v1274_v8  ;;  %v153_v8 = vsel %vm97_vm11, %v149_v6, 0.0 }
  0x58   :  { %434 = vmatprep.subr.bf16.mxu0 %v1426_v1 }
  0x5b   :  { %435 = vmatpush2.bf16.msra.mxu0 %v1275_v9 }
  0x5c   :  { %436 = vmatprep.subr.bf16.mxu0 %v1426_v1 }
  0x5f   :  { %437 = vmatpush2.bf16.msra.mxu0 %v1276_v10 }
  0x60   :  { %438 = vmatprep.subr.bf16.mxu0 %v1426_v1 }
  0x63   :  { %439 = vmatpush2.bf16.msra.mxu0 %v1277_v12 }
  0x64   :  { %440 = vmatprep.subr.bf16.mxu0 %v1426_v1 }
  0x67   :  { %441 = vmatpush2.bf16.msra.mxu0 %v1278_v13 }
  0x68   :  { %442 = vmatprep.subr.bf16.mxu0 %v1426_v1 }
  0x6b   :  { %443 = vmatpush2.bf16.msra.mxu0 %v1279_v14 }
  0xb0   :  { %v1183_v19 = vpop.permute.xlu1 %1182 }
  0xb1   :  { %v1168_v21 = vpop.permute.xlu0 %1167  ;;  %v1185_v35 = vunpack.i.h.bf16 %v1183_v19  ;;  %v1184_v36 = vunpack.i.l.bf16 %v1183_v19 }
  0xb2   :  { %v1170_v25 = vunpack.i.h.bf16 %v1168_v21  ;;  %v1169_v26 = vunpack.i.l.bf16 %v1168_v21 }
  0xb4   :  { %v1188_v28 = vpop.permute.xlu1 %1187  ;;  %v261_v38 = vsel %vm260_vm12, %v111_v5, %v1169_v26  ;;  %v262_v39 = vsel %vm260_vm12, %v109_v27, %v1170_v25  ;;  %v1280_v5 = vld [vmem:[#allocation7 + $0x38] sm:$0xff]  }
  0xb5   :  { %v1190_v29 = vunpack.i.h.bf16 %v1188_v28  ;;  %v1189_v30 = vunpack.i.l.bf16 %v1188_v28  ;;  %v1173_v31 = vpop.permute.xlu0 %1172  ;;  %v266_v50 = vsel %vm265_vm13, %v261_v38, %v1184_v36  ;;  %v267_v51 = vsel %vm265_vm13, %v262_v39, %v1185_v35  ;;  %767 = vmatpush1.bf16.msra.mxu1 %v1280_v5  ;;  %v1281_v28 = vld [vmem:[#allocation7 + $0x30] sm:$0xff]   ;;  %v1288_v35 = vld [vmem:[#allocation7 + $0x68] sm:$0xff]  }
  0xb6   :  { %v1175_v33 = vunpack.i.h.bf16 %v1173_v31  ;;  %v1174_v34 = vunpack.i.l.bf16 %v1173_v31  ;;  %768 = vmatprep.subr.bf16.mxu1 %v1426_v1  ;;  %v1284_v31 = vld [vmem:[#allocation7 + $0x18] sm:$0xff]  }
  0xb8   :  { %v1193_v40 = vpop.permute.xlu1 %1192  ;;  %v275_v41 = vsel %vm260_vm12, %v148_v4, %v1174_v34  ;;  %v276_v42 = vsel %vm260_vm12, %v151_v32, %v1175_v33  ;;  %v1285_v4 = vld [vmem:[#allocation7 + $0x10] sm:$0xff]   ;;  %v1286_v32 = vld [vmem:[#allocation7 + $0x8] sm:$0xff]   ;;  %v1287_v33 = vld [vmem:[#allocation7] sm:$0xff]  }
  0xb9   :  { %v1178_v43 = vpop.permute.xlu0 %1177  ;;  %v279_v44 = vsel %vm265_vm13, %v275_v41, %v1189_v30  ;;  %v280_v45 = vsel %vm265_vm13, %v276_v42, %v1190_v29  ;;  %v1195_v55 = vunpack.i.h.bf16 %v1193_v40  ;;  %v1194_v56 = vunpack.i.l.bf16 %v1193_v40  ;;  %769 = vmatpush1.bf16.msra.mxu1 %v1281_v28  ;;  %v1282_v29 = vld [vmem:[#allocation7 + $0x28] sm:$0xff]   ;;  %v1283_v30 = vld [vmem:[#allocation7 + $0x20] sm:$0xff]   ;;  %v1070_v34 = vld [vmem:[%s1872_s2] ss:$0 sm:$0xff] }
  0xba   :  { %v1180_v47 = vunpack.i.h.bf16 %v1178_v43  ;;  %v1179_v11 = vunpack.i.l.bf16 %v1178_v43  ;;  %v284_v48 = vpack.c.bf16 %v280_v45, %v279_v44  ;;  %770 = vmatprep.subr.bf16.mxu1 %v1426_v1  ;;  %v1290_v41 = vld [vmem:[#allocation7 + $0x58] sm:$0xff]  }
  0xbb   :  { %v264_v10 = vsel %vm260_vm12, %v107_v59, %v1195_v55  ;;  %v263_v12 = vsel %vm260_vm12, %v113_v60, %v1194_v56 }
  0xbc   :  { %1085 = vmatprep.mubr.msk.bf16.mxu0 %vm270_vm14, %v284_v48  ;;  %v1203_v52 = vpop.permute.xlu1 %1202  ;;  %v271_v53 = vsel %vm270_vm14, %v266_v50, %v1179_v11  ;;  %v272_v54 = vsel %vm270_vm14, %v267_v51, %v1180_v47 }
  0xbd   :  { %v1198_v57 = vpop.permute.xlu0 %1197  ;;  %v283_v58 = vpack.c.bf16 %v272_v54, %v271_v53  ;;  %v1205_v61 = vunpack.i.h.bf16 %v1203_v52  ;;  %v1204_v62 = vunpack.i.l.bf16 %v1203_v52  ;;  %771 = vmatpush1.bf16.msra.mxu1 %v1282_v29 }
  0xbe   :  { %v1200_v63 = vunpack.i.h.bf16 %v1198_v57  ;;  %v1199_v0 = vunpack.i.l.bf16 %v1198_v57  ;;  %772 = vmatprep.subr.bf16.mxu1 %v1426_v1 }
  0xbf   :  { %445 = vmatmul.mubr.bf16.vlgmr.msra.gmra.mxu0 %v283_v58  ;;  %v268_v16 = vsel %vm265_vm13, %v263_v12, %v1204_v62  ;;  %v269_v17 = vsel %vm265_vm13, %v264_v10, %v1205_v61  ;;  %v1292_v58 = vld [vmem:[#allocation7 + $0x48] sm:$0xff]  }
  0xc0   :  { %v1213_v9 = vpop.permute.xlu1 %1212  ;;  %v278_v21 = vsel %vm260_vm12, %v153_v8, %v1200_v63  ;;  %v277_v18 = vsel %vm260_vm12, %v146_v7, %v1199_v0 }
  0xc1   :  { %v1215_v13 = vunpack.i.h.bf16 %v1213_v9  ;;  %v1214_v14 = vunpack.i.l.bf16 %v1213_v9  ;;  %v1208_v15 = vpop.permute.xlu0 %1207  ;;  %773 = vmatpush1.bf16.msra.mxu1 %v1283_v30 }
  0xc2   :  { %v1210_v19 = vunpack.i.h.bf16 %v1208_v15  ;;  %v1209_v20 = vunpack.i.l.bf16 %v1208_v15  ;;  %774 = vmatprep.subr.bf16.mxu1 %v1426_v1 }
  0xc3   :  { %v273_v22 = vsel %vm270_vm14, %v268_v16, %v1214_v14  ;;  %v274_v23 = vsel %vm270_vm14, %v269_v17, %v1215_v13  ;;  %v1293_v16 = vld [vmem:[#allocation7 + $0x40] sm:$0xff]  }
  0xc4   :  { %v281_v24 = vsel %vm265_vm13, %v277_v18, %v1209_v20  ;;  %v282_v25 = vsel %vm265_vm13, %v278_v21, %v1210_v19  ;;  %v285_v26 = vpack.c.bf16 %v274_v23, %v273_v22 }
  0xc5   :  { %v286_v27 = vpack.c.bf16 %v282_v25, %v281_v24  ;;  %775 = vmatpush1.bf16.msra.mxu1 %v1284_v31 }
  0xc6   :  { %776 = vmatprep.subr.bf16.mxu1 %v1426_v1 }
  0xc7   :  { %1086 = vmatprep.mubr.msk.bf16.mxu0 %vm270_vm14, %v286_v27 }
  0xc8   :  { %453 = vmatmul.mubr.bf16.gmra.mxu0 %v285_v26 }
  0xc9   :  { %777 = vmatpush1.bf16.msra.mxu1 %v1285_v4 }
  0xca   :  { %778 = vmatprep.subr.bf16.mxu1 %v1426_v1 }
  0xcd   :  { %779 = vmatpush1.bf16.msra.mxu1 %v1286_v32 }
  0xce   :  { %780 = vmatprep.subr.bf16.mxu1 %v1426_v1 }
  0xd1   :  { %781 = vmatpush1.bf16.msra.mxu1 %v1287_v33 }
  0xd2   :  { %786 = vmatprep.subr.bf16.mxu1 %v1426_v1 }
  0xd5   :  { %787 = vmatpush2.bf16.msra.mxu1 %v1288_v35 }
  0xd6   :  { %788 = vmatprep.subr.bf16.mxu1 %v1426_v1 }
  0xd9   :  { %789 = vmatpush2.bf16.msra.mxu1 %v1289_v37 }
  0xda   :  { %790 = vmatprep.subr.bf16.mxu1 %v1426_v1 }
  0xdd   :  { %791 = vmatpush2.bf16.msra.mxu1 %v1290_v41 }
  0xde   :  { %792 = vmatprep.subr.bf16.mxu1 %v1426_v1 }
  0xe1   :  { %793 = vmatpush2.bf16.msra.mxu1 %v1291_v46 }
  0xe2   :  { %794 = vmatprep.subr.bf16.mxu1 %v1426_v1 }
  0xe5   :  { %795 = vmatpush2.bf16.msra.mxu1 %v1292_v58 }
  0xe6   :  { %796 = vmatprep.subr.bf16.mxu1 %v1426_v1 }
  0xe9   :  { %797 = vmatpush2.bf16.msra.mxu1 %v1293_v16 }
 0x17f   :  { %v446_v36 = vpop.f32.mrf.mxu0 }
 0x180   :  { %v447_v38 = vadd.f32 %v1070_v34, %v446_v36 }
 0x181   :  { %v448_v39 = vpop.f32.mrf.mxu0 }
 0x182   :  { %v1681_v42 = vmax.f32 %v447_v38, 0.0 }
 0x183   :  { %v449_v40 = vpop.f32.mrf.mxu0 }
 0x184   :  { %v450_v43 = vadd.f32 %v1070_v34, %v449_v40  ;;  %v465_v48 = vrot.slane %v1681_v42, 5  ;;  %v501_v51 = vrot.slane %v1681_v42, 1  ;;  %v513_v0 = vrot.slane %v1681_v42, 2 }
 0x185   :  { %v451_v44 = vpop.f32.mrf.mxu0  ;;  %v477_v10 = vrot.slane %v1681_v42, 6  ;;  %v489_v15 = vrot.slane %v1681_v42, 7  ;;  %v525_v18 = vrot.slane %v1681_v42, 3 }
 0x186   :  { %v1684_v45 = vmax.f32 %v450_v43, 0.0 }
 0x188   :  { %v454_v47 = vpop.f32.mrf.mxu0  ;;  %v1216_v11 = vpack.i.bf16 %v1684_v45, %v1681_v42  ;;  %v466_v50 = vrot.slane %v1684_v45, 5  ;;  %v502_v52 = vrot.slane %v1684_v45, 1  ;;  %v514_v57 = vrot.slane %v1684_v45, 2 }
 0x189   :  { %v455_v49 = vadd.f32 %v1070_v34, %v454_v47  ;;  %v526_v61 = vrot.slane %v1684_v45, 3  ;;  %v478_v14 = vrot.slane %v1684_v45, 6  ;;  %v490_v29 = vrot.slane %v1684_v45, 7 }
 0x18a   :  { %v456_v53 = vpop.f32.mrf.mxu0  ;;  %1217 = vrot.lane.b32.xlu0 %v1216_v11, %s1428_s5  ;;  %v1700_v55 = vsel %vm106_vm8, %v465_v48, %v466_v50  ;;  %v1706_v56 = vsel %vm145_vm9, %v501_v51, %v502_v52  ;;  %v519_v12 = vsel %vm158_vm7, %v513_v0, %v514_v57 }
 0x18b   :  { %v1694_v54 = vmax.f32 %v455_v49, 0.0  ;;  %v531_v27 = vsel %vm171_vm4, %v525_v18, %v526_v61  ;;  %v483_v5 = vsel %vm119_vm3, %v477_v10, %v478_v14  ;;  %v495_v41 = vsel %vm132_vm1, %v489_v15, %v490_v29 }
 0x18c   :  { %v457_v6 = vpop.f32.mrf.mxu0 }
 0x18d   :  { %v458_v59 = vadd.f32 %v1070_v34, %v457_v6  ;;  %v515_v60 = vrot.slane %v1694_v54, 2  ;;  %v527_v62 = vrot.slane %v1694_v54, 3  ;;  %v479_v20 = vrot.slane %v1694_v54, 6 }
 0x18e   :  { %v459_v63 = vpop.f32.mrf.mxu0  ;;  %v467_v23 = vrot.slane %v1694_v54, 5  ;;  %v503_v26 = vrot.slane %v1694_v54, 1  ;;  %v491_v32 = vrot.slane %v1694_v54, 7 }
 0x18f   :  { %v1714_v7 = vmax.f32 %v458_v59, 0.0  ;;  %v518_v8 = vsel %vm158_vm7, %v514_v57, %v515_v60  ;;  %v530_v9 = vsel %vm171_vm4, %v526_v61, %v527_v62  ;;  %v482_v4 = vsel %vm119_vm3, %v478_v14, %v479_v20 }
 0x190   :  { %v522_v13 = vsel %vm99_vm6, %v518_v8, 0.0  ;;  %v534_v22 = vsel %vm101_vm5, %v530_v9, 0.0  ;;  %v1766_v38 = vsel %vm106_vm8, %v466_v50, %v467_v23  ;;  %v506_v39 = vsel %vm145_vm9, %v502_v52, %v503_v26 }
 0x191   :  { %v1221_v17 = vpack.i.bf16 %v522_v13, %v519_v12  ;;  %v480_v19 = vrot.slane %v1714_v7, 6  ;;  %v492_v21 = vrot.slane %v1714_v7, 7  ;;  %v516_v25 = vrot.slane %v1714_v7, 2 }
 0x192   :  { %v1226_v30 = vpack.i.bf16 %v534_v22, %v531_v27  ;;  %v468_v35 = vrot.slane %v1714_v7, 5  ;;  %v528_v37 = vrot.slane %v1714_v7, 3  ;;  %v487_v40 = vsel %vm92_vm2, %v482_v4, 0.0 }
 0x193   :  { %1222 = vrot.lane.b32.xlu1 %v1221_v17, %s1427_s3  ;;  %v484_v1 = vsel %vm119_vm3, %v480_v19, %v477_v10  ;;  %v496_v24 = vsel %vm132_vm1, %v492_v21, %v489_v15  ;;  %v481_v33 = vsel %vm119_vm3, %v479_v20, %v480_v19  ;;  %v520_v36 = vsel %vm158_vm7, %v516_v25, %v513_v0 }
 0x194   :  { %v485_v28 = vsel %vm92_vm2, %v484_v1, 0.0  ;;  %v497_v34 = vsel %vm94_vm0, %v496_v24, 0.0  ;;  %v472_v43 = vsel %vm106_vm8, %v468_v35, %v465_v48  ;;  %v1780_v44 = vsel %vm106_vm8, %v467_v23, %v468_v35 }
 0x195   :  { %v1241_v31 = vpack.i.bf16 %v483_v5, %v485_v28  ;;  %v1231_v45 = vpack.i.bf16 %v481_v33, %v487_v40  ;;  %v1246_v46 = vpack.i.bf16 %v495_v41, %v497_v34  ;;  %v494_v47 = vsel %vm132_vm1, %v490_v29, %v491_v32 }
 0x196   :  { %v504_v11 = vrot.slane %v1714_v7, 1  ;;  %v493_v49 = vsel %vm132_vm1, %v491_v32, %v492_v21  ;;  %v517_v50 = vsel %vm158_vm7, %v515_v60, %v516_v25  ;;  %v524_v48 = vsel %vm99_vm6, %v520_v36, 0.0 }
 0x197   :  { %1227 = vrot.lane.b32.xlu1 %v1226_v30, %s1419_s27  ;;  %1242 = vrot.lane.b32.xlu0 %v1241_v31, %s1427_s3  ;;  %v532_v52 = vsel %vm171_vm4, %v528_v37, %v525_v18  ;;  %v499_v57 = vsel %vm94_vm0, %v494_v47, 0.0  ;;  %v1251_v59 = vpack.i.bf16 %v524_v48, %v517_v50  ;;  %v529_v60 = vsel %vm171_vm4, %v527_v62, %v528_v37 }
 0x198   :  { %v1797_v53 = vsel %vm145_vm9, %v503_v26, %v504_v11  ;;  %v508_v6 = vsel %vm145_vm9, %v504_v11, %v501_v51  ;;  %v1236_v58 = vpack.i.bf16 %v493_v49, %v499_v57  ;;  %v536_v61 = vsel %vm101_vm5, %v532_v52, 0.0 }
 0x199   :  { %v1261_v42 = vpack.i.bf16 %v1714_v7, %v1694_v54  ;;  %v1256_v51 = vpack.i.bf16 %v536_v61, %v529_v60  ;;  %v510_v14 = vsel %vm97_vm11, %v506_v39, 0.0  ;;  %v473_v22 = vsel %vm90_vm10, %v472_v43, 0.0  ;;  %v1294_v60 = vld [vmem:[#allocation8 + $0x38] sm:$0xff]  }
 0x19a   :  { %v512_v41 = vsel %vm97_vm11, %v508_v6, 0.0  ;;  %v1429_v61 = vmov 0.0   ;;  %vm952_vm0 = vcmask 1043456   ;;  %vm853_vm1 = vcmask 1041409  }
 0x19b   :  { %1232 = vrot.lane.b32.xlu1 %v1231_v45, %s1427_s3  ;;  %1247 = vrot.lane.b32.xlu0 %v1246_v46, %s1419_s27  ;;  %vm948_vm2 = vcmask 64512  }
 0x19c   :  { %1125 = vmatprep.subr.bf16.mxu0 %v1429_v61  ;;  %1145 = vmatprep.subr.bf16.mxu1 %v1429_v61 }
 0x19d   :  { %1126 = vmatpush3.bf16.msra.mxu0 %v1294_v60  ;;  %1141 = vmatprep.mubr.msk.bf16.mxu0 %vm1430_vm15, %v1429_v61 }
 0x19e   :  { %1127 = vmatprep.subr.bf16.mxu0 %v1429_v61 }
 0x19f   :  { %1237 = vrot.lane.b32.xlu1 %v1236_v58, %s1419_s27  ;;  %1252 = vrot.lane.b32.xlu0 %v1251_v59, %s1427_s3 }
 0x1a3   :  { %1262 = vrot.lane.b32.xlu1 %v1261_v42, %s1428_s5  ;;  %1257 = vrot.lane.b32.xlu0 %v1256_v51, %s1419_s27  ;;  %v1296_v42 = vld [vmem:[#allocation8 + $0x28] sm:$0xff]   ;;  %v1297_v51 = vld [vmem:[#allocation8 + $0x20] sm:$0xff]  }
 0x1fc   :  { %v1218_v63 = vpop.permute.xlu0 %1217 }
 0x1fd   :  { %v1220_v24 = vunpack.i.h.bf16 %v1218_v63  ;;  %v1219_v25 = vunpack.i.l.bf16 %v1218_v63  ;;  %v1298_v63 = vld [vmem:[#allocation8 + $0x18] sm:$0xff]  }
 0x205   :  { %v1223_v0 = vpop.permute.xlu1 %1222 }
 0x206   :  { %v1225_v8 = vunpack.i.h.bf16 %v1223_v0  ;;  %v1224_v9 = vunpack.i.l.bf16 %v1223_v0  ;;  %v1299_v0 = vld [vmem:[#allocation8 + $0x10] sm:$0xff]  }
 0x208   :  { %v629_v54 = vsel %vm260_vm12, %v1706_v56, %v1224_v9  ;;  %v630_v7 = vsel %vm260_vm12, %v510_v14, %v1225_v8  ;;  %v1300_v8 = vld [vmem:[#allocation8 + $0x8] sm:$0xff]   ;;  %v947_v9 = vld [vmem:[%s1876_s6] sm:$0xf] }
 0x209   :  { %v1228_v62 = vpop.permute.xlu1 %1227  ;;  %v1243_v10 = vpop.permute.xlu0 %1242 }
 0x20a   :  { %v1230_v12 = vunpack.i.h.bf16 %v1228_v62  ;;  %v1229_v13 = vunpack.i.l.bf16 %v1228_v62  ;;  %v1245_v15 = vunpack.i.h.bf16 %v1243_v10  ;;  %v1244_v16 = vunpack.i.l.bf16 %v1243_v10  ;;  %v1301_v62 = vld [vmem:[#allocation8] sm:$0xff]  }
 0x20b   :  { %v954_v10 = vsel %vm952_vm0, %v947_v9, 0 }
 0x20c   :  { %v633_v17 = vsel %vm265_vm13, %v629_v54, %v1229_v13  ;;  %v634_v19 = vsel %vm265_vm13, %v630_v7, %v1230_v12  ;;  %v617_v26 = vsel %vm260_vm12, %v473_v22, %v1244_v16  ;;  %v618_v56 = vsel %vm260_vm12, %v1700_v55, %v1245_v15  ;;  %v1087_v13 = vld [vmem:[%s1874_s4] ss:$0 sm:$0xff]  ;;  %s1432_s4 = smov [#allocation10]  }
 0x20d   :  { %v1233_v20 = vpop.permute.xlu1 %1232  ;;  %v1248_v21 = vpop.permute.xlu0 %1247  ;;  %v638_v18 = vpack.c.bf16 %v634_v19, %v633_v17  ;;  %v475_v55 = vsel %vm90_vm10, %v1766_v38, 0.0  ;;  %s1056_s6 = sshll.u32 %s1432_s4, 4  ;;  %s1057_s6 = int_to_ptr.vmem [resolvable:$true] %s1056_s6 }
 0x20e   :  { %v1250_v23 = vunpack.i.h.bf16 %v1248_v21  ;;  %v1249_v1 = vunpack.i.l.bf16 %v1248_v21  ;;  %v1235_v28 = vunpack.i.h.bf16 %v1233_v20  ;;  %v1234_v29 = vunpack.i.l.bf16 %v1233_v20  ;;  %s1390_s28 = scalar_lea.vmem %s1057_s6, 512  ;;  %p1395_p7 = scmp.lt.s32.totalorder %s1057_s6, %s1057_s6 }
 0x20f   :  { %1102 = vmatprep.mubr.msk.bf16.mxu1 %vm270_vm14, %v638_v18  ;;  %p1391_p6 = scmp.ne.s32.totalorder %s1057_s6, %s1390_s28  ;;  %p1396_p8 = scmp.lt.s32.totalorder %s1390_s28, %s1390_s28 }
 0x210   :  { %v621_v27 = vsel %vm265_vm13, %v617_v26, %v1249_v1  ;;  %v622_v5 = vsel %vm265_vm13, %v618_v56, %v1250_v23  ;;  %v620_v39 = vsel %vm260_vm12, %v1780_v44, %v1235_v28  ;;  %v619_v40 = vsel %vm260_vm12, %v475_v55, %v1234_v29 }
 0x211   :  { %v1238_v30 = vpop.permute.xlu1 %1237  ;;  %v1253_v31 = vpop.permute.xlu0 %1252  ;;  %v625_v4 = vsel %vm270_vm14, %v621_v27, %v1219_v25  ;;  %v626_v32 = vsel %vm270_vm14, %v622_v5, %v1220_v24  ;;  %p1397_p9 = por %p1396_p8, %p1395_p7 }
 0x212   :  { %v1240_v33 = vunpack.i.h.bf16 %v1238_v30  ;;  %v1239_v34 = vunpack.i.l.bf16 %v1238_v30  ;;  %v1255_v35 = vunpack.i.h.bf16 %v1253_v31  ;;  %v1254_v36 = vunpack.i.l.bf16 %v1253_v31 }
 0x213   :  { %v637_v37 = vpack.c.bf16 %v626_v32, %v625_v4  ;;  %p1398_p10 = pnand %p1397_p9, %p1391_p6 }
 0x214   :  { %v623_v50 = vsel %vm265_vm13, %v619_v40, %v1239_v34  ;;  %v624_v48 = vsel %vm265_vm13, %v620_v39, %v1240_v33  ;;  %v632_v38 = vsel %vm260_vm12, %v512_v41, %v1255_v35  ;;  %v631_v44 = vsel %vm260_vm12, %v1797_v53, %v1254_v36  ;;  %v1295_v53 = vld [vmem:[#allocation8 + $0x30] sm:$0xff]  }
 0x215   :  { %799 = vmatmul.mubr.bf16.vlgmr.msra.gmra.mxu1 %v637_v37  ;;  %v1263_v43 = vpop.permute.xlu1 %1262  ;;  %v1258_v45 = vpop.permute.xlu0 %1257  ;;  %1128 = vmatpush3.bf16.msra.mxu0 %v1295_v53  ;;  %v1027_v53 = vsub.s32 0, %v1499_v2 }
 0x216   :  { %v1265_v46 = vunpack.i.h.bf16 %v1263_v43  ;;  %v1264_v47 = vunpack.i.l.bf16 %v1263_v43  ;;  %v1260_v11 = vunpack.i.h.bf16 %v1258_v45  ;;  %v1259_v49 = vunpack.i.l.bf16 %v1258_v45  ;;  %1129 = vmatprep.subr.bf16.mxu0 %v1429_v61  ;;  %1146 = vmatpush3.bf16.msra.mxu1 %v954_v10 }
 0x218   :  { %v635_v52 = vsel %vm265_vm13, %v631_v44, %v1259_v49  ;;  %v636_v3 = vsel %vm265_vm13, %v632_v38, %v1260_v11  ;;  %v627_v6 = vsel %vm270_vm14, %v623_v50, %v1264_v47  ;;  %v628_v57 = vsel %vm270_vm14, %v624_v48, %v1265_v46 }
 0x219   :  { %v640_v58 = vpack.c.bf16 %v636_v3, %v635_v52  ;;  %v639_v59 = vpack.c.bf16 %v628_v57, %v627_v6  ;;  %1130 = vmatpush3.bf16.msra.mxu0 %v1296_v42  ;;  %v1431_v6 = vmov 1966171168  }
 0x21a   :  { %1131 = vmatprep.subr.bf16.mxu0 %v1429_v61  ;;  %v1004_v57 = vunpack.c.l.s4 %v1431_v6 }
 0x21b   :  { %1103 = vmatprep.mubr.msk.bf16.mxu1 %vm270_vm14, %v640_v58 }
 0x21c   :  { %v1005_v58 = vunpack.c.0.s8 %v1004_v57 }
 0x21d   :  { %807 = vmatmul.mubr.bf16.gmra.mxu1 %v639_v59  ;;  %1132 = vmatpush3.bf16.msra.mxu0 %v1297_v51 }
 0x21e   :  { %1133 = vmatprep.subr.bf16.mxu0 %v1429_v61  ;;  %1147 = vmatprep.mubr.msk.bf16.mxu1 %vm1430_vm15, %v1429_v61  ;;  %v1008_v59 = vsub.s32 %v1005_v58, %v1499_v2 }
 0x221   :  { %1134 = vmatpush3.bf16.msra.mxu0 %v1298_v63 }
 0x222   :  { %1135 = vmatprep.subr.bf16.mxu0 %v1429_v61 }
 0x225   :  { %1136 = vmatpush3.bf16.msra.mxu0 %v1299_v0 }
 0x226   :  { %1137 = vmatprep.subr.bf16.mxu0 %v1429_v61 }
 0x229   :  { %1138 = vmatpush3.bf16.msra.mxu0 %v1300_v8 }
 0x22a   :  { %1139 = vmatprep.subr.bf16.mxu0 %v1429_v61 }
 0x22d   :  { %1140 = vmatpush3.bf16.msra.mxu0 %v1301_v62 }
 0x2d5   :  { %v800_v12 = vpop.f32.mrf.mxu1 }
 0x2d6   :  { %v801_v16 = vadd.f32 %v1087_v13, %v800_v12 }
 0x2d7   :  { %v802_v14 = vpop.f32.mrf.mxu1 }
 0x2d9   :  { %v803_v15 = vpop.f32.mrf.mxu1 }
 0x2da   :  { %v804_v54 = vadd.f32 %v1087_v13, %v803_v15  ;;  %v1307_v15 = vld [vmem:[#allocation2 + $0x8] sm:$0xff] }
 0x2db   :  { %v805_v7 = vpop.f32.mrf.mxu1 }
 0x2dc   :  { %v815_v17 = vadd.f32 %v804_v54, %v801_v16 }
 0x2dd   :  { %v808_v19 = vpop.f32.mrf.mxu1 }
 0x2de   :  { %v816_v20 = vrot.slane %v815_v17, 4  ;;  %v809_v1 = vadd.f32 %v1087_v13, %v808_v19 }
 0x2df   :  { %v810_v21 = vpop.f32.mrf.mxu1 }
 0x2e0   :  { %v817_v18 = vadd.f32 %v816_v20, %v815_v17  ;;  %v1308_v17 = vld [vmem:[#allocation2 + $0x10] sm:$0xff]  ;;  %v1309_v20 = vld [vmem:[#allocation2 + $0x18] sm:$0xff] }
 0x2e1   :  { %v811_v22 = vpop.f32.mrf.mxu1 }
 0x2e2   :  { %v818_v23 = vrot.slane %v817_v18, 2  ;;  %v812_v24 = vadd.f32 %v1087_v13, %v811_v22  ;;  %v1306_v13 = vld [vmem:[#allocation2] sm:$0xff] }
 0x2e3   :  { %v813_v25 = vpop.f32.mrf.mxu1 }
 0x2e4   :  { %v819_v26 = vadd.f32 %v818_v23, %v817_v18  ;;  %v822_v56 = vadd.f32 %v812_v24, %v809_v1 }
 0x2e6   :  { %v820_v27 = vrot.slane %v819_v26, 1  ;;  %v823_v5 = vrot.slane %v822_v56, 4 }
 0x2e8   :  { %v824_v28 = vadd.f32 %v823_v5, %v822_v56  ;;  %v821_v29 = vadd.f32 %v820_v27, %v819_v26 }
 0x2ea   :  { %v825_v30 = vrot.slane %v824_v28, 2  ;;  %v829_v4 = vmul.f32 0.0625, %v821_v29 }
 0x2ec   :  { %v826_v31 = vadd.f32 %v825_v30, %v824_v28  ;;  %v831_v34 = vpack.c.bf16 %v829_v4, %v829_v4 }
 0x2ee   :  { %v827_v32 = vrot.slane %v826_v31, 1  ;;  %v851_v37 = vunpack.c.l.b16 %v831_v34 }
 0x2f0   :  { %v828_v33 = vadd.f32 %v827_v32, %v826_v31 }
 0x2f2   :  { %v830_v35 = vmul.f32 0.0625, %v828_v33 }
 0x2f4   :  { %v832_v36 = vpack.c.bf16 %v830_v35, %v830_v35 }
 0x2f6   :  { %v852_v55 = vunpack.c.l.b16 %v832_v36 }
 0x2f8   :  { %v854_v39 = vsel %vm853_vm1, %v852_v55, %v851_v37 }
 0x2f9   :  { %v855_v40 = vpack.c.b16 %v854_v39, %v854_v39 }
 0x2fb   :  { %1142 = vmatmul.mubr.bf16.vlgmr.msra.gmra.mxu0 %v855_v40 }
 0x3bb   :  { %v939_v41 = vpop.f32.mrf.mxu0 }
 0x3bc   :  { %v945_v43 = vmax.f32 %v939_v41, 0.0 }
 0x3bd   :  { %v1143_v45 = vpop.f32.mrf.mxu0 }
 0x3be   :  { %v946_v46 = vpack.c.bf16 %v945_v43, %v945_v43 }
 0x3bf   :  { %v942_v47 = vpop.f32.mrf.mxu0 }
 0x3c0   :  { %1148 = vmatmul.mubr.msk.bf16.vlgmr.msra.gmra.mxu1 %vm948_vm2, %v946_v46 }
 0x3c1   :  { %v1144_v11 = vpop.f32.mrf.mxu0 }
 0x480   :  { %v990_v49 = vpop.f32.mrf.mxu1 }
 0x481   :  { %v1113_v50 = vmul.f32 -1.442695, %v990_v49 }
 0x482   :  { %v1149_v48 = vpop.f32.mrf.mxu1 }
 0x483   :  { %1302 = vpow2.f32 %v1113_v50 }
 0x484   :  { %v993_v38 = vpop.f32.mrf.mxu1 }
 0x486   :  { %v1150_v44 = vpop.f32.mrf.mxu1 }
 0x490   :  { %v1303_v52 = vpop.eup %1302 }
 0x491   :  { %v999_v3 = vadd.f32 1.0, %v1303_v52 }
 0x493   :  { %1304 = vrcp.f32 %v999_v3 }
 0x4a0   :  { %v1305_v60 = vpop.eup %1304 }
 0x4a1   :  { %v1009_v61 = vrot.slane %v1305_v60, %v1008_v59 }
 0x4a3   :  { %v1010_v42 = vcombine.high %v1009_v61, %v1009_v61  ;;  %v1017_v51 = vrot.slane %v1009_v61, %v1008_v59 }
 0x4a5   :  { %v1024_v63 = vrot.slane %v1010_v42, %v1008_v59  ;;  %v1028_v0 = vrot.slane %v1017_v51, %v1027_v53 }
 0x4a7   :  { %v1032_v8 = vrot.slane %v1024_v63, %v1027_v53  ;;  %v1035_v9 = vmul.f32 %v1028_v0, %v801_v16  ;;  %v1036_v62 = vmul.f32 %v1028_v0, %v804_v54 }
 0x4a9   :  { %v1037_v10 = vmul.f32 %v1032_v8, %v809_v1  ;;  %v1038_v12 = vmul.f32 %v1032_v8, %v812_v24  ;;  %v1039_v14 = vadd.f32 %v1306_v13, %v1035_v9  ;;  %v1040_v7 = vadd.f32 %v1307_v15, %v1036_v62 }
 0x4ab   :  { %v1041_v19 = vadd.f32 %v1308_v17, %v1037_v10  ;;  %v1042_v21 = vadd.f32 %v1309_v20, %v1038_v12  ;;  %v1043_v2 = vmax.f32 %v1039_v14, 0.0  ;;  %v1044_v18 = vmax.f32 %v1040_v7, 0.0 }
 0x4ad   :  { %v1045_v22 = vmax.f32 %v1041_v19, 0.0  ;;  %v1046_v23 = vmax.f32 %v1042_v21, 0.0  ;;  %1047 = vst.msk [vmem:[#allocation10] sm:$0xff] %vm260_vm12, %v1043_v2  ;;  %1048 = vst.msk [vmem:[#allocation10 + $0x8] sm:$0xff] %vm260_vm12, %v1044_v18 }
 0x4af   :  { %1049 = vst.msk [vmem:[#allocation10 + $0x10] sm:$0xff] %vm260_vm12, %v1045_v22  ;;  %1050 = vst.msk [vmem:[#allocation10 + $0x18] sm:$0xff] %vm260_vm12, %v1046_v23 }
 0x4b0   :  { %1401 = shalt.err (!%p1398_p10)
}
 0x4b1   :  { %1062 = dma.vmem_to_hbm [thread:$0]  %s1057_s6, 512, %s1877_s7, [#allocation4], %s1422_s11, %s1422_s11, %s1423_s12  }
 0x4b2   :  { %1416 = dma.done.wait [#allocation4], 512  }
 0x4b3   :  { %1417 = vsyncadd [#allocation4], 4294966784 }
 0x4b4   :  { %1066 = vsyncpa [#allocation3], 1 }
 0x4b5   :  { %1067 = vsyncpa [#allocation6], 1 }
 0x4b6   :  { %1068 = vsyncpa [#allocation9], 1 }
 0x4b7   :  { %1069 = vsyncpa [#allocation4], 1 }

</bundles_post_ra>
